<compile_context>
chip_gen: v7x
topology: tpu7x:2x2x1
jax: 0.10.0
libtpu: 0.0.40
codegen_flags: <defaults>
</compile_context>

<pallas_src>
import jax
import jax.numpy as jnp
from jax.experimental import pallas as pl
from jax.experimental.pallas import tpu as pltpu


def _round_up(n, m):
    return ((n + m - 1) // m) * m


def dqn_forward_kernel(x_ref, w1_ref, b1_ref, w2_ref, b2_ref, w3_ref, b3_ref,
                       out_ref):
    # x_ref: bf16 [TILE_B, K_pad]; weights bf16; biases f32; out f32.
    x = x_ref[...]
    # layer1 (bf16 MXU, f32 accumulate) + f32 bias + f32 tanh (EUP)
    h1 = jnp.tanh(
        jnp.dot(x, w1_ref[...], preferred_element_type=jnp.float32)
        + b1_ref[...])
    # layer2
    h2 = jnp.tanh(
        jnp.dot(h1.astype(jnp.bfloat16), w2_ref[...],
                preferred_element_type=jnp.float32)
        + b2_ref[...])
    # layer3 (linear head, no activation) -> lane-dense [TILE_B, A_pad] store
    out_ref[...] = (
        jnp.dot(h2.astype(jnp.bfloat16), w3_ref[...],
                preferred_element_type=jnp.float32)
        + b3_ref[...])


def prepare_params(w1, b1, w2, b2, w3, b3):
    """One-time (init-time) padding + dtype prep for the kernel.

    - w1: zero-pad K (state_size) up to a multiple of 128, cast to bf16.
    - w3/b3: zero-pad A (action_size) up to a multiple of 128.
    - w2 cast to bf16; biases stay f32.
    Padding with zeros does not change the math (zero rows/cols contribute 0,
    padded output columns are sliced away by the wrapper).
    """
    S, H = w1.shape
    A = w3.shape[1]
    k_pad = _round_up(S, 128)
    a_pad = _round_up(A, 128)

    w1p = jnp.zeros((k_pad, H), jnp.bfloat16).at[:S, :].set(
        w1.astype(jnp.bfloat16))
    w2p = w2.astype(jnp.bfloat16)
    w3p = jnp.zeros((H, a_pad), jnp.bfloat16).at[:, :A].set(
        w3.astype(jnp.bfloat16))
    b3p = jnp.zeros((1, a_pad), jnp.float32).at[:, :A].set(
        b3.astype(jnp.float32))
    return (w1p, b1.astype(jnp.float32), w2p, b2.astype(jnp.float32),
            w3p, b3p)


def dqn_forward(x, w1, b1, w2, b2, w3, b3, *, action_size=None, tile_b=128):
    """x: f32 [B, state_size]; params from prepare_params. Returns f32 [B, A]."""
    B, S = x.shape
    K_pad, H = w1.shape
    A_pad = w3.shape[1]
    A = A_pad if action_size is None else action_size

    # Batch tile: multiple of 8 sublanes, at most tile_b (128 default).
    tb = min(tile_b, _round_up(B, 8))
    B_pad = _round_up(B, tb)

    # Per-call activation prep: zero-pad batch and state dims, cast to bf16.
    xp = jnp.zeros((B_pad, K_pad), jnp.bfloat16).at[:B, :S].set(
        x.astype(jnp.bfloat16))

    out = pl.pallas_call(
        dqn_forward_kernel,
        out_shape=jax.ShapeDtypeStruct((B_pad, A_pad), jnp.float32),
        grid=(B_pad // tb,),
        in_specs=[
            pl.BlockSpec((tb, K_pad), lambda i: (i, 0)),   # activations stream
            pl.BlockSpec((K_pad, H), lambda i: (0, 0)),    # w1 resident
            pl.BlockSpec((1, H), lambda i: (0, 0)),        # b1 resident
            pl.BlockSpec((H, H), lambda i: (0, 0)),        # w2 resident
            pl.BlockSpec((1, H), lambda i: (0, 0)),        # b2 resident
            pl.BlockSpec((H, A_pad), lambda i: (0, 0)),    # w3 resident
            pl.BlockSpec((1, A_pad), lambda i: (0, 0)),    # b3 resident
        ],
        out_specs=pl.BlockSpec((tb, A_pad), lambda i: (i, 0)),
        compiler_params=pltpu.CompilerParams(
            dimension_semantics=("parallel",),   # batch tiles -> both v7x TCs
            vmem_limit_bytes=8 << 20,            # footprint ~1 MiB; ample room
        ),
    )(xp, w1, b1, w2, b2, w3, b3)

    return out[:B, :A]


def init_params(key, state_size, action_size, hidden=256):
    # Deterministic synthetic parameters matching the module's layer shapes.
    # NOTE: the PyTorch __init__ zero-fills the weights; we use small
    # deterministic random values instead so the kernel compute is non-trivial.
    # Biases follow PyTorch's default uniform(-1/sqrt(fan_in), 1/sqrt(fan_in)).
    keys = jax.random.split(key, 6)

    def uni(k, shape, fan_in):
        bound = 1.0 / jnp.sqrt(jnp.float32(fan_in))
        return jax.random.uniform(k, shape, jnp.float32, -bound, bound)

    w1 = uni(keys[0], (state_size, hidden), state_size)   # layer1.weight.T
    b1 = uni(keys[1], (1, hidden), state_size)            # layer1.bias
    w2 = uni(keys[2], (hidden, hidden), hidden)           # layer2.weight.T
    b2 = uni(keys[3], (1, hidden), hidden)                # layer2.bias
    w3 = uni(keys[4], (hidden, action_size), hidden)      # layer3.weight.T
    b3 = uni(keys[5], (1, action_size), hidden)           # layer3.bias
    return w1, b1, w2, b2, w3, b3


def dqn_forward_ref(x, w1, b1, w2, b2, w3, b3):
    # Reference uses the same bf16-matmul / f32-accumulate / f32-tanh recipe as
    # the kernel so the comparison is apples-to-apples.
    bf = jnp.bfloat16
    h1 = jnp.tanh(
        jnp.dot(x.astype(bf), w1.astype(bf),
                preferred_element_type=jnp.float32) + b1)
    h2 = jnp.tanh(
        jnp.dot(h1.astype(bf), w2.astype(bf),
                preferred_element_type=jnp.float32) + b2)
    return jnp.dot(h2.astype(bf), w3.astype(bf),
                   preferred_element_type=jnp.float32) + b3


if __name__ == "__main__":
    state_size = 8
    action_size = 4
    batch = 2  # PyTorch forward handles a single 1-D state; we batch it.

    key = jax.random.PRNGKey(0)
    k_x, k_p, k_big = jax.random.split(key, 3)
    x = jax.random.normal(k_x, (batch, state_size), dtype=jnp.float32)
    raw_params = init_params(k_p, state_size, action_size)
    params = prepare_params(*raw_params)

    # Small-batch run (single grid step, padded to 8 rows internally).
    actions = dqn_forward(x, *params, action_size=action_size)
    actions = jax.block_until_ready(actions)
    expected = dqn_forward_ref(x, *raw_params)
    assert actions.shape == (batch, action_size)
    assert jnp.allclose(actions, expected, atol=1e-3, rtol=1e-3)

    # Larger-batch run exercising the multi-tile (grid > 1) streaming path.
    big_batch = 256
    x_big = jax.random.normal(k_big, (big_batch, state_size), dtype=jnp.float32)
    actions_big = jax.block_until_ready(
        dqn_forward(x_big, *params, action_size=action_size))
    expected_big = dqn_forward_ref(x_big, *raw_params)
    assert actions_big.shape == (big_batch, action_size)
    assert jnp.allclose(actions_big, expected_big, atol=1e-3, rtol=1e-3)

    # TODO(synk): replay()/act()/memory/optimizer/epsilon bookkeeping are
    # training-loop host logic, not part of the forward pass, and are not
    # translated to Pallas.

    print("KERNEL_OK")
</pallas_src>

<mosaic_0001>
module attributes {stable_mosaic.version = 11 : i64} {
  func.func @dqn_forward_kernel(%arg0: i32, %arg1: memref<8x128xbf16, #tpu.memory_space<vmem>>, %arg2: memref<128x256xbf16, #tpu.memory_space<vmem>>, %arg3: memref<1x256xf32, #tpu.memory_space<vmem>>, %arg4: memref<256x256xbf16, #tpu.memory_space<vmem>>, %arg5: memref<1x256xf32, #tpu.memory_space<vmem>>, %arg6: memref<256x128xbf16, #tpu.memory_space<vmem>>, %arg7: memref<1x128xf32, #tpu.memory_space<vmem>>, %arg8: memref<8x128xf32, #tpu.memory_space<vmem>>) attributes {dimension_semantics = [#tpu.dimension_semantics<parallel>], iteration_bounds = array<i64: 1>, scalar_prefetch = 0 : i64, scratch_operands = 0 : i64, tpu.core_type = #tpu.core_type<tc>, window_params = [{transform_indices = @transform_0, window_bounds = array<i64: 8, 128>}, {pipeline_mode = #tpu.pipeline_mode<synchronous>, transform_indices = @transform_1, window_bounds = array<i64: 128, 256>}, {pipeline_mode = #tpu.pipeline_mode<synchronous>, transform_indices = @transform_2, window_bounds = array<i64: 1, 256>}, {pipeline_mode = #tpu.pipeline_mode<synchronous>, transform_indices = @transform_3, window_bounds = array<i64: 256, 256>}, {pipeline_mode = #tpu.pipeline_mode<synchronous>, transform_indices = @transform_4, window_bounds = array<i64: 1, 256>}, {pipeline_mode = #tpu.pipeline_mode<synchronous>, transform_indices = @transform_5, window_bounds = array<i64: 256, 128>}, {pipeline_mode = #tpu.pipeline_mode<synchronous>, transform_indices = @transform_6, window_bounds = array<i64: 1, 128>}, {transform_indices = @transform_7, window_bounds = array<i64: 8, 128>}]} {
    %c0 = arith.constant 0 : index
    %c0_0 = arith.constant 0 : index
    %0 = vector.load %arg1[%c0, %c0_0] : memref<8x128xbf16, #tpu.memory_space<vmem>>, vector<8x128xbf16>
    %c0_1 = arith.constant 0 : index
    %c0_2 = arith.constant 0 : index
    %1 = vector.load %arg2[%c0_1, %c0_2] : memref<128x256xbf16, #tpu.memory_space<vmem>>, vector<128x256xbf16>
    %cst = arith.constant dense<0.000000e+00> : vector<8x256xf32>
    %2 = tpu.matmul %0, %1, %cst {dimension_numbers = #tpu.dot_dimension_numbers<[1], [0], [0], [1], [0, 0, 1, 1], [], []>} : vector<8x128xbf16>, vector<128x256xbf16>, vector<8x256xf32> -> vector<8x256xf32>
    %c0_3 = arith.constant 0 : index
    %c0_4 = arith.constant 0 : index
    %3 = vector.load %arg3[%c0_3, %c0_4] : memref<1x256xf32, #tpu.memory_space<vmem>>, vector<1x256xf32>
    %4 = vector.broadcast %3 : vector<1x256xf32> to vector<8x256xf32>
    %5 = arith.addf %2, %4 : vector<8x256xf32>
    %6 = math.tanh %5 : vector<8x256xf32>
    %7 = arith.truncf %6 : vector<8x256xf32> to vector<8x256xbf16>
    %c0_5 = arith.constant 0 : index
    %c0_6 = arith.constant 0 : index
    %8 = vector.load %arg4[%c0_5, %c0_6] : memref<256x256xbf16, #tpu.memory_space<vmem>>, vector<256x256xbf16>
    %cst_7 = arith.constant dense<0.000000e+00> : vector<8x256xf32>
    %9 = tpu.matmul %7, %8, %cst_7 {dimension_numbers = #tpu.dot_dimension_numbers<[1], [0], [0], [1], [0, 0, 1, 1], [], []>} : vector<8x256xbf16>, vector<256x256xbf16>, vector<8x256xf32> -> vector<8x256xf32>
    %c0_8 = arith.constant 0 : index
    %c0_9 = arith.constant 0 : index
    %10 = vector.load %arg5[%c0_8, %c0_9] : memref<1x256xf32, #tpu.memory_space<vmem>>, vector<1x256xf32>
    %11 = vector.broadcast %10 : vector<1x256xf32> to vector<8x256xf32>
    %12 = arith.addf %9, %11 : vector<8x256xf32>
    %13 = math.tanh %12 : vector<8x256xf32>
    %14 = arith.truncf %13 : vector<8x256xf32> to vector<8x256xbf16>
    %c0_10 = arith.constant 0 : index
    %c0_11 = arith.constant 0 : index
    %15 = vector.load %arg6[%c0_10, %c0_11] : memref<256x128xbf16, #tpu.memory_space<vmem>>, vector<256x128xbf16>
    %cst_12 = arith.constant dense<0.000000e+00> : vector<8x128xf32>
    %16 = tpu.matmul %14, %15, %cst_12 {dimension_numbers = #tpu.dot_dimension_numbers<[1], [0], [0], [1], [0, 0, 1, 1], [], []>} : vector<8x256xbf16>, vector<256x128xbf16>, vector<8x128xf32> -> vector<8x128xf32>
    %c0_13 = arith.constant 0 : index
    %c0_14 = arith.constant 0 : index
    %17 = vector.load %arg7[%c0_13, %c0_14] : memref<1x128xf32, #tpu.memory_space<vmem>>, vector<1x128xf32>
    %18 = vector.broadcast %17 : vector<1x128xf32> to vector<8x128xf32>
    %19 = arith.addf %16, %18 : vector<8x128xf32>
    %c0_15 = arith.constant 0 : index
    %c0_16 = arith.constant 0 : index
    %20 = vector.load %arg8[%c0_15, %c0_16] : memref<8x128xf32, #tpu.memory_space<vmem>>, vector<8x128xf32>
    tpu.vector_store %arg8[%c0_15, %c0_16], %19 {strides = array<i32>} : memref<8x128xf32, #tpu.memory_space<vmem>>, vector<8x128xf32>,
    return
  }
  func.func @transform_0(%arg0: i32) -> (i32, i32) {
    %c0_i32 = arith.constant 0 : i32
    %c0_i32_0 = arith.constant 0 : i32
    return %arg0, %c0_i32 : i32, i32
  }
  func.func @transform_1(%arg0: i32) -> (i32, i32) {
    %c0_i32 = arith.constant 0 : i32
    %c0_i32_0 = arith.constant 0 : i32
    %c0_i32_1 = arith.constant 0 : i32
    return %c0_i32, %c0_i32_0 : i32, i32
  }
  func.func @transform_2(%arg0: i32) -> (i32, i32) {
    %c0_i32 = arith.constant 0 : i32
    %c0_i32_0 = arith.constant 0 : i32
    %c0_i32_1 = arith.constant 0 : i32
    return %c0_i32, %c0_i32_0 : i32, i32
  }
  func.func @transform_3(%arg0: i32) -> (i32, i32) {
    %c0_i32 = arith.constant 0 : i32
    %c0_i32_0 = arith.constant 0 : i32
    %c0_i32_1 = arith.constant 0 : i32
    return %c0_i32, %c0_i32_0 : i32, i32
  }
  func.func @transform_4(%arg0: i32) -> (i32, i32) {
    %c0_i32 = arith.constant 0 : i32
    %c0_i32_0 = arith.constant 0 : i32
    %c0_i32_1 = arith.constant 0 : i32
    return %c0_i32, %c0_i32_0 : i32, i32
  }
  func.func @transform_5(%arg0: i32) -> (i32, i32) {
    %c0_i32 = arith.constant 0 : i32
    %c0_i32_0 = arith.constant 0 : i32
    %c0_i32_1 = arith.constant 0 : i32
    return %c0_i32, %c0_i32_0 : i32, i32
  }
  func.func @transform_6(%arg0: i32) -> (i32, i32) {
    %c0_i32 = arith.constant 0 : i32
    %c0_i32_0 = arith.constant 0 : i32
    %c0_i32_1 = arith.constant 0 : i32
    return %c0_i32, %c0_i32_0 : i32, i32
  }
  func.func @transform_7(%arg0: i32) -> (i32, i32) {
    %c0_i32 = arith.constant 0 : i32
    %c0_i32_0 = arith.constant 0 : i32
    return %arg0, %c0_i32 : i32, i32
  }
}

</mosaic_0001>

<bundles_post_ra>
// kernel: tpu_custom_call.1
= control target key start
LH: loop header
LB: loop body
LE: loop exit
PB: predicated region body
PF: predicated region fallthrough
CT: control target
= control target key end

     0   :  { %12 = vsyncpa [#allocation3], 0  ;;  %s1113_s0 = inlined_call_operand.hbm [shape: bf16[8,128], index: 0, kind: input, shape index: {}]   ;;  %s1114_s1 = inlined_call_operand.hbm [shape: bf16[128,256], index: 1, kind: input, shape index: {}]   ;;  %s1115_s2 = inlined_call_operand.vmem [shape: f32[1,256], index: 2, kind: input, shape index: {}]   ;;  %s1116_s3 = inlined_call_operand.hbm [shape: bf16[256,256], index: 3, kind: input, shape index: {}]   ;;  %s1117_s4 = inlined_call_operand.vmem [shape: f32[1,256], index: 4, kind: input, shape index: {}]   ;;  %s1118_s5 = inlined_call_operand.hbm [shape: bf16[256,128], index: 5, kind: input, shape index: {}]   ;;  %s1119_s6 = inlined_call_operand.vmem [shape: f32[1,128], index: 6, kind: input, shape index: {}]   ;;  %s1120_s7 = inlined_call_operand.hbm [shape: f32[8,128], index: 7, kind: output, shape index: {}]  }
   0x1   :  { %13 = vsyncpa [#allocation6], 0 }
   0x2   :  { %14 = vsyncpa [#allocation9], 0 }
   0x3   :  { %15 = vsyncpa [#allocation4], 0  ;;  %s988_s24 = smov [#allocation5]   ;;  %s870_s28 = scalar_lea.hbm %s1114_s1, 2048 }
   0x4   :  { %s31_s25 = sshll.u32 %s988_s24, 4  ;;  %p871_p0 = scmp.ne.s32.totalorder %s1114_s1, %s870_s28  ;;  %s32_s25 = int_to_ptr.vmem [resolvable:$true] %s31_s25 }
   0x5   :  { %p874_p1 = scmp.lt.u32.totalorder %s870_s28, %s1114_s1 }
   0x7   :  { %p876_p2 = pnand %p874_p1, %p871_p0 }
   0x9   :  { %879 = shalt.err (!%p876_p2)
}
   0xa   :  { %s880_s10 = scalar_lea.vmem %s32_s25, 2048  ;;  %p885_p4 = scmp.lt.s32.totalorder %s32_s25, %s32_s25 }
   0xb   :  { %p881_p3 = scmp.ne.s32.totalorder %s32_s25, %s880_s10  ;;  %p886_p5 = scmp.lt.s32.totalorder %s880_s10, %s880_s10 }
   0xd   :  { %p887_p6 = por %p886_p5, %p885_p4 }
   0xf   :  { %p888_p7 = pnand %p887_p6, %p881_p3 }
  0x11   :  { %891 = shalt.err (!%p888_p7)
}
  0x12   :  { %s989_s11 = smov 128   ;;  %s990_s12 = smov 8  }
  0x13   :  { %37 = dma.hbm_to_vmem [thread:$0]  %s1114_s1, 2048, %s32_s25, [#allocation6], %s989_s11, %s989_s11, %s990_s12  }
  0x14   :  { %s991_s15 = smov [#allocation2]   ;;  %s992_s17 = smov [#allocation7]  }
  0x15   :  { %s22_s16 = sshll.u32 %s991_s15, 4  ;;  %s45_s18 = sshll.u32 %s992_s17, 4  ;;  %s23_s16 = int_to_ptr.vmem [resolvable:$true] %s22_s16  ;;  %s46_s18 = int_to_ptr.vmem [resolvable:$true] %s45_s18 }
  0x16   :  { %s892_s21 = scalar_lea.hbm %s1113_s0, 64 }
  0x17   :  { %p893_p8 = scmp.ne.s32.totalorder %s1113_s0, %s892_s21  ;;  %p896_p9 = scmp.lt.u32.totalorder %s892_s21, %s1113_s0 }
  0x19   :  { %p898_p10 = pnand %p896_p9, %p893_p8 }
  0x1b   :  { %901 = shalt.err (!%p898_p10)
}
  0x1c   :  { %s902_s1 = scalar_lea.vmem %s23_s16, 64  ;;  %p907_p12 = scmp.lt.s32.totalorder %s23_s16, %s23_s16 }
  0x1d   :  { %p903_p11 = scmp.ne.s32.totalorder %s23_s16, %s902_s1  ;;  %p908_p13 = scmp.lt.s32.totalorder %s902_s1, %s902_s1 }
  0x1f   :  { %p909_p0 = por %p908_p13, %p907_p12 }
  0x21   :  { %p910_p1 = pnand %p909_p0, %p903_p11 }
  0x23   :  { %913 = shalt.err (!%p910_p1)
}
  0x24   :  { %25 = dma.hbm_to_vmem [thread:$0]  %s1113_s0, 64, %s23_s16, [#allocation3]  }
  0x25   :  { %s914_s30 = scalar_lea.hbm %s1116_s3, 4096 }
  0x26   :  { %p915_p2 = scmp.ne.s32.totalorder %s1116_s3, %s914_s30  ;;  %p918_p3 = scmp.lt.u32.totalorder %s914_s30, %s1116_s3 }
  0x28   :  { %p920_p4 = pnand %p918_p3, %p915_p2 }
  0x2a   :  { %923 = shalt.err (!%p920_p4)
}
  0x2b   :  { %s924_s14 = scalar_lea.vmem %s46_s18, 4096  ;;  %p929_p6 = scmp.lt.s32.totalorder %s46_s18, %s46_s18 }
  0x2c   :  { %p925_p5 = scmp.ne.s32.totalorder %s46_s18, %s924_s14  ;;  %p930_p7 = scmp.lt.s32.totalorder %s924_s14, %s924_s14 }
  0x2e   :  { %p931_p8 = por %p930_p7, %p929_p6 }
  0x30   :  { %p932_p9 = pnand %p931_p8, %p925_p5 }
  0x32   :  { %935 = shalt.err (!%p932_p9)
}
  0x33   :  { %51 = dma.hbm_to_vmem [thread:$0]  %s1116_s3, 4096, %s46_s18, [#allocation6], %s989_s11, %s989_s11, %s990_s12  }
  0x34   :  { %s993_s16 = smov [#allocation8]   ;;  %s936_s21 = scalar_lea.hbm %s1118_s5, 2048 }
  0x35   :  { %s59_s17 = sshll.u32 %s993_s16, 4  ;;  %p937_p10 = scmp.ne.s32.totalorder %s1118_s5, %s936_s21  ;;  %s60_s17 = int_to_ptr.vmem [resolvable:$true] %s59_s17 }
  0x36   :  { %p940_p11 = scmp.lt.u32.totalorder %s936_s21, %s1118_s5 }
  0x38   :  { %p942_p12 = pnand %p940_p11, %p937_p10 }
  0x3a   :  { %945 = shalt.err (!%p942_p12)
}
  0x3b   :  { %s946_s1 = scalar_lea.vmem %s60_s17, 2048  ;;  %p951_p0 = scmp.lt.s32.totalorder %s60_s17, %s60_s17 }
  0x3c   :  { %p947_p13 = scmp.ne.s32.totalorder %s60_s17, %s946_s1  ;;  %p952_p1 = scmp.lt.s32.totalorder %s946_s1, %s946_s1 }
  0x3e   :  { %p953_p2 = por %p952_p1, %p951_p0 }
  0x40   :  { %p954_p3 = pnand %p953_p2, %p947_p13 }
  0x42   :  { %957 = shalt.err (!%p954_p3)
}
  0x43   :  { %s994_s3 = smov 64   ;;  %s995_s11 = smov 4  }
  0x44   :  { %65 = dma.hbm_to_vmem [thread:$0]  %s1118_s5, 2048, %s60_s17, [#allocation9], %s994_s3, %s994_s3, %s995_s11  }
  0x45   :  { %980 = dma.done.wait [#allocation3], 64  }
  0x46   :  { %981 = vsyncadd [#allocation3], 4294967232 }
  0x47   :  { %982 = dma.done.wait [#allocation6], 6144  }
  0x48   :  { %983 = vsyncadd [#allocation6], 4294961152 }
  0x49   :  { %984 = dma.done.wait [#allocation9], 2048  }
  0x4a   :  { %985 = vsyncadd [#allocation9], 4294965248  ;;  %v996_v0 = vmov 0   ;;  %v774_v1 = vld [vmem:[#allocation5 + $0x4] ss:$8 sps:$4 sm:$0xff]   ;;  %v850_v54 = vld [vmem:[#allocation8 + $0x50] sm:$0xff]   ;;  %v100_v58 = vlaneseq }
  0x4b   :  { %222 = vmatprep.mubr.bf16.mxu0 %v996_v0  ;;  %v776_v2 = vld [vmem:[#allocation5] ss:$8 sps:$4 sm:$0xff]   ;;  %190 = vmatprep.subr.bf16.mxu0 %v774_v1  ;;  %v777_v3 = vld [vmem:[#allocation5 + $0x14] ss:$8 sps:$4 sm:$0xff]   ;;  %v779_v4 = vld [vmem:[#allocation5 + $0x10] ss:$8 sps:$4 sm:$0xff]  }
  0x4c   :  { %191 = vmatpush1.bf16.msra.mxu0 %v776_v2  ;;  %v780_v5 = vld [vmem:[#allocation5 + $0x24] ss:$8 sps:$4 sm:$0xff]   ;;  %v782_v6 = vld [vmem:[#allocation5 + $0x20] ss:$8 sps:$4 sm:$0xff]   ;;  %v783_v7 = vld [vmem:[#allocation5 + $0x34] ss:$8 sps:$4 sm:$0xff]  }
  0x4d   :  { %192 = vmatprep.subr.bf16.mxu0 %v777_v3  ;;  %v785_v8 = vld [vmem:[#allocation5 + $0x30] ss:$8 sps:$4 sm:$0xff]   ;;  %v786_v9 = vld [vmem:[#allocation5 + $0x44] ss:$8 sps:$4 sm:$0xff]   ;;  %v800_v11 = vld [vmem:[#allocation7] ss:$8 sps:$4 sm:$0xff]  }
  0x4e   :  { %v798_v10 = vld [vmem:[#allocation7 + $0x4] ss:$8 sps:$4 sm:$0xff]   ;;  %v801_v12 = vld [vmem:[#allocation7 + $0x14] ss:$8 sps:$4 sm:$0xff]   ;;  %v788_v13 = vld [vmem:[#allocation5 + $0x40] ss:$8 sps:$4 sm:$0xff]  }
  0x4f   :  { %439 = vmatprep.subr.bf16.mxu1 %v798_v10  ;;  %v803_v14 = vld [vmem:[#allocation7 + $0x10] ss:$8 sps:$4 sm:$0xff]   ;;  %v804_v15 = vld [vmem:[#allocation7 + $0x24] ss:$8 sps:$4 sm:$0xff]   ;;  %v789_v16 = vld [vmem:[#allocation5 + $0x54] ss:$8 sps:$4 sm:$0xff]  }
  0x50   :  { %193 = vmatpush1.bf16.msra.mxu0 %v779_v4  ;;  %440 = vmatpush1.bf16.msra.mxu1 %v800_v11  ;;  %v791_v17 = vld [vmem:[#allocation5 + $0x50] ss:$8 sps:$4 sm:$0xff]   ;;  %v806_v18 = vld [vmem:[#allocation7 + $0x20] ss:$8 sps:$4 sm:$0xff]   ;;  %v807_v19 = vld [vmem:[#allocation7 + $0x34] ss:$8 sps:$4 sm:$0xff]  }
  0x51   :  { %194 = vmatprep.subr.bf16.mxu0 %v780_v5  ;;  %441 = vmatprep.subr.bf16.mxu1 %v801_v12  ;;  %v792_v20 = vld [vmem:[#allocation5 + $0x64] ss:$8 sps:$4 sm:$0xff]   ;;  %v794_v21 = vld [vmem:[#allocation5 + $0x60] ss:$8 sps:$4 sm:$0xff]   ;;  %v809_v22 = vld [vmem:[#allocation7 + $0x30] ss:$8 sps:$4 sm:$0xff]  }
  0x52   :  { %v810_v23 = vld [vmem:[#allocation7 + $0x44] ss:$8 sps:$4 sm:$0xff]   ;;  %v795_v24 = vld [vmem:[#allocation5 + $0x74] ss:$8 sps:$4 sm:$0xff]   ;;  %v797_v25 = vld [vmem:[#allocation5 + $0x70] ss:$8 sps:$4 sm:$0xff]  }
  0x53   :  { %v812_v26 = vld [vmem:[#allocation7 + $0x40] ss:$8 sps:$4 sm:$0xff]   ;;  %v813_v27 = vld [vmem:[#allocation7 + $0x54] ss:$8 sps:$4 sm:$0xff]   ;;  %v815_v28 = vld [vmem:[#allocation7 + $0x50] ss:$8 sps:$4 sm:$0xff]  }
  0x54   :  { %195 = vmatpush1.bf16.msra.mxu0 %v782_v6  ;;  %442 = vmatpush1.bf16.msra.mxu1 %v803_v14  ;;  %v81_v29 = vld [vmem:[#allocation2] sm:$0xf]  ;;  %v816_v30 = vld [vmem:[#allocation7 + $0x64] ss:$8 sps:$4 sm:$0xff]   ;;  %v818_v31 = vld [vmem:[#allocation7 + $0x60] ss:$8 sps:$4 sm:$0xff]  }
  0x55   :  { %196 = vmatprep.subr.bf16.mxu0 %v783_v7  ;;  %443 = vmatprep.subr.bf16.mxu1 %v804_v15  ;;  %v819_v32 = vld [vmem:[#allocation7 + $0x74] ss:$8 sps:$4 sm:$0xff]   ;;  %v821_v33 = vld [vmem:[#allocation7 + $0x70] ss:$8 sps:$4 sm:$0xff]   ;;  %v822_v34 = vld [vmem:[#allocation7 + $0x84] ss:$8 sps:$4 sm:$0xff]  }
  0x56   :  { %v824_v35 = vld [vmem:[#allocation7 + $0x80] ss:$8 sps:$4 sm:$0xff]   ;;  %v825_v36 = vld [vmem:[#allocation7 + $0x94] ss:$8 sps:$4 sm:$0xff]   ;;  %v827_v37 = vld [vmem:[#allocation7 + $0x90] ss:$8 sps:$4 sm:$0xff]  }
  0x57   :  { %v828_v38 = vld [vmem:[#allocation7 + $0xa4] ss:$8 sps:$4 sm:$0xff]   ;;  %v830_v39 = vld [vmem:[#allocation7 + $0xa0] ss:$8 sps:$4 sm:$0xff]   ;;  %v831_v40 = vld [vmem:[#allocation7 + $0xb4] ss:$8 sps:$4 sm:$0xff]  }
  0x58   :  { %197 = vmatpush1.bf16.msra.mxu0 %v785_v8  ;;  %444 = vmatpush1.bf16.msra.mxu1 %v806_v18  ;;  %v833_v41 = vld [vmem:[#allocation7 + $0xb0] ss:$8 sps:$4 sm:$0xff]   ;;  %v834_v42 = vld [vmem:[#allocation7 + $0xc4] ss:$8 sps:$4 sm:$0xff]   ;;  %v836_v43 = vld [vmem:[#allocation7 + $0xc0] ss:$8 sps:$4 sm:$0xff]  }
  0x59   :  { %198 = vmatprep.subr.bf16.mxu0 %v786_v9  ;;  %445 = vmatprep.subr.bf16.mxu1 %v807_v19  ;;  %v837_v44 = vld [vmem:[#allocation7 + $0xd4] ss:$8 sps:$4 sm:$0xff]   ;;  %v839_v45 = vld [vmem:[#allocation7 + $0xd0] ss:$8 sps:$4 sm:$0xff]   ;;  %v840_v46 = vld [vmem:[#allocation7 + $0xe4] ss:$8 sps:$4 sm:$0xff]  }
  0x5a   :  { %v842_v47 = vld [vmem:[#allocation7 + $0xe0] ss:$8 sps:$4 sm:$0xff]   ;;  %v843_v48 = vld [vmem:[#allocation7 + $0xf4] ss:$8 sps:$4 sm:$0xff]   ;;  %v845_v49 = vld [vmem:[#allocation7 + $0xf0] ss:$8 sps:$4 sm:$0xff]  }
  0x5b   :  { %v846_v50 = vld [vmem:[#allocation8 + $0x40] sm:$0xff]   ;;  %v848_v52 = vld [vmem:[#allocation8 + $0x48] sm:$0xff]   ;;  %v851_v55 = vld [vmem:[#allocation8 + $0x10] sm:$0xff]   ;;  %v101_v59 = vshrl.u32 %v100_v58, 7 }
  0x5c   :  { %199 = vmatpush1.bf16.msra.mxu0 %v788_v13  ;;  %446 = vmatpush1.bf16.msra.mxu1 %v809_v22  ;;  %v847_v51 = vld [vmem:[#allocation8] sm:$0xff]   ;;  %v849_v53 = vld [vmem:[#allocation8 + $0x8] sm:$0xff]   ;;  %v852_v56 = vld [vmem:[#allocation8 + $0x58] sm:$0xff]  }
  0x5d   :  { %200 = vmatprep.subr.bf16.mxu0 %v789_v16  ;;  %447 = vmatprep.subr.bf16.mxu1 %v810_v23  ;;  %v853_v57 = vld [vmem:[#allocation8 + $0x18] sm:$0xff]   ;;  %v102_v60 = vsub.s32 0, %v101_v59  ;;  %v106_v62 = vsub.s32 1, %v101_v59  ;;  %v854_v11 = vld [vmem:[#allocation8 + $0x60] sm:$0xff]   ;;  %v856_v13 = vld [vmem:[#allocation8 + $0x68] sm:$0xff]  }
  0x5e   :  { %v98_v61 = vld [vmem:[%s1115_s2] sm:$0x3]  ;;  %v855_v12 = vld [vmem:[#allocation8 + $0x20] sm:$0xff]   ;;  %v857_v14 = vld [vmem:[#allocation8 + $0x28] sm:$0xff]  }
  0x5f   :  { %v103_v63 = vrot.slane %v98_v61, %v102_v60  ;;  %v107_v0 = vrot.slane %v98_v61, %v106_v62  ;;  %v858_v15 = vld [vmem:[#allocation8 + $0x70] sm:$0xff]   ;;  %v861_v18 = vld [vmem:[#allocation8 + $0x38] sm:$0xff]  }
  0x60   :  { %201 = vmatpush1.bf16.msra.mxu0 %v791_v17  ;;  %448 = vmatpush1.bf16.msra.mxu1 %v812_v26  ;;  %v859_v16 = vld [vmem:[#allocation8 + $0x30] sm:$0xff]   ;;  %v860_v17 = vld [vmem:[#allocation8 + $0x78] sm:$0xff]  }
  0x61   :  { %202 = vmatprep.subr.bf16.mxu0 %v792_v20  ;;  %449 = vmatprep.subr.bf16.mxu1 %v813_v27  ;;  %v267_v19 = vld [vmem:[%s1117_s4] sm:$0x3]  ;;  %s997_s4 = smov [#allocation10]  }
  0x62   :  { %v272_v20 = vrot.slane %v267_v19, %v102_v60  ;;  %s666_s30 = sshll.u32 %s997_s4, 4  ;;  %s667_s30 = int_to_ptr.vmem [resolvable:$true] %s666_s30 }
  0x63   :  { %s958_s8 = scalar_lea.vmem %s667_s30, 128  ;;  %p963_p5 = scmp.lt.s32.totalorder %s667_s30, %s667_s30 }
  0x64   :  { %203 = vmatpush1.bf16.msra.mxu0 %v794_v21  ;;  %450 = vmatpush1.bf16.msra.mxu1 %v815_v28  ;;  %v276_v21 = vrot.slane %v267_v19, %v106_v62  ;;  %p959_p4 = scmp.ne.s32.totalorder %s667_s30, %s958_s8  ;;  %p964_p6 = scmp.lt.s32.totalorder %s958_s8, %s958_s8 }
  0x65   :  { %204 = vmatprep.subr.bf16.mxu0 %v795_v24  ;;  %451 = vmatprep.subr.bf16.mxu1 %v816_v30 }
  0x66   :  { %p965_p7 = por %p964_p6, %p963_p5 }
  0x68   :  { %205 = vmatpush1.bf16.msra.mxu0 %v797_v25  ;;  %452 = vmatpush1.bf16.msra.mxu1 %v818_v31  ;;  %p966_p8 = pnand %p965_p7, %p959_p4 }
  0x69   :  { %453 = vmatprep.subr.bf16.mxu1 %v819_v32  ;;  %742 = vmatprep.subr.bf16.mxu0 %v846_v50 }
  0x6b   :  { %223 = vmatmul.mubr.bf16.vlgmr.msra.gmra.mrb[0].mxu0 %v81_v29 }
  0x6c   :  { %454 = vmatpush1.bf16.msra.mxu1 %v821_v33  ;;  %743 = vmatpush3.bf16.msra.mxu0 %v847_v51  ;;  %v725_v33 = vld [vmem:[%s1119_s6] ss:$0 sm:$0xff] }
  0x6d   :  { %455 = vmatprep.subr.bf16.mxu1 %v822_v34  ;;  %744 = vmatprep.subr.bf16.mxu0 %v848_v52 }
  0x70   :  { %456 = vmatpush1.bf16.msra.mxu1 %v824_v35  ;;  %745 = vmatpush3.bf16.msra.mxu0 %v849_v53 }
  0x71   :  { %457 = vmatprep.subr.bf16.mxu1 %v825_v36  ;;  %746 = vmatprep.subr.bf16.mxu0 %v850_v54 }
  0x74   :  { %458 = vmatpush1.bf16.msra.mxu1 %v827_v37  ;;  %747 = vmatpush3.bf16.msra.mxu0 %v851_v55 }
  0x75   :  { %459 = vmatprep.subr.bf16.mxu1 %v828_v38  ;;  %748 = vmatprep.subr.bf16.mxu0 %v852_v56 }
  0x78   :  { %460 = vmatpush1.bf16.msra.mxu1 %v830_v39  ;;  %749 = vmatpush3.bf16.msra.mxu0 %v853_v57 }
  0x79   :  { %461 = vmatprep.subr.bf16.mxu1 %v831_v40  ;;  %750 = vmatprep.subr.bf16.mxu0 %v854_v11 }
  0x7c   :  { %462 = vmatpush1.bf16.msra.mxu1 %v833_v41  ;;  %751 = vmatpush3.bf16.msra.mxu0 %v855_v12 }
  0x7d   :  { %463 = vmatprep.subr.bf16.mxu1 %v834_v42  ;;  %752 = vmatprep.subr.bf16.mxu0 %v856_v13 }
  0x80   :  { %464 = vmatpush1.bf16.msra.mxu1 %v836_v43  ;;  %753 = vmatpush3.bf16.msra.mxu0 %v857_v14 }
  0x81   :  { %465 = vmatprep.subr.bf16.mxu1 %v837_v44  ;;  %754 = vmatprep.subr.bf16.mxu0 %v858_v15 }
  0x84   :  { %466 = vmatpush1.bf16.msra.mxu1 %v839_v45  ;;  %755 = vmatpush3.bf16.msra.mxu0 %v859_v16 }
  0x85   :  { %467 = vmatprep.subr.bf16.mxu1 %v840_v46  ;;  %756 = vmatprep.subr.bf16.mxu0 %v860_v17 }
  0x88   :  { %468 = vmatpush1.bf16.msra.mxu1 %v842_v47  ;;  %757 = vmatpush3.bf16.msra.mxu0 %v861_v18 }
  0x89   :  { %469 = vmatprep.subr.bf16.mxu1 %v843_v48 }
  0x8c   :  { %470 = vmatpush1.bf16.msra.mxu1 %v845_v49 }
 0x13e   :  { %v224_v1 = vpop.f32.mrb[0].mxu0 }
 0x13f   :  { %v225_v2 = vadd.f32 %v224_v1, %v103_v63  ;;  %v226_v3 = vpop.f32.mrb[1].mxu0 }
 0x140   :  { %v227_v4 = vadd.f32 %v226_v3, %v107_v0  ;;  %v228_v5 = vpop.f32.mrb[2].mxu0 }
 0x141   :  { %862 = vtanh.f32 %v225_v2  ;;  %v229_v6 = vpop.f32.mrb[3].mxu0 }
 0x142   :  { %864 = vtanh.f32 %v227_v4 }
 0x14b   :  { %v863_v7 = vpop.eup %862 }
 0x14c   :  { %v865_v8 = vpop.eup %864  ;;  %v233_v10 = vpack.c.bf16 %v863_v7, %v863_v7 }
 0x14d   :  { %v234_v9 = vpack.c.bf16 %v865_v8, %v865_v8 }
 0x14f   :  { %471 = vmatprep.mubr.bf16.mxu1 %v234_v9 }
 0x150   :  { %472 = vmatmul.mubr.bf16.vlgmr.msra.gmra.mrb[0].mxu1 %v233_v10 }
 0x223   :  { %v473_v22 = vpop.f32.mrb[0].mxu1 }
 0x224   :  { %v474_v23 = vadd.f32 %v473_v22, %v272_v20  ;;  %v475_v24 = vpop.f32.mrb[1].mxu1 }
 0x225   :  { %v476_v25 = vadd.f32 %v475_v24, %v276_v21  ;;  %v477_v26 = vpop.f32.mrb[2].mxu1 }
 0x226   :  { %866 = vtanh.f32 %v474_v23  ;;  %v478_v27 = vpop.f32.mrb[3].mxu1 }
 0x227   :  { %868 = vtanh.f32 %v476_v25 }
 0x230   :  { %v867_v28 = vpop.eup %866 }
 0x231   :  { %v869_v29 = vpop.eup %868  ;;  %v482_v31 = vpack.c.bf16 %v867_v28, %v867_v28 }
 0x232   :  { %v483_v30 = vpack.c.bf16 %v869_v29, %v869_v29 }
 0x234   :  { %651 = vmatprep.mubr.bf16.mxu0 %v483_v30 }
 0x235   :  { %652 = vmatmul.mubr.bf16.vlgmr.msra.gmra.mrb[4].mxu0 %v482_v31 }
 0x308   :  { %v758_v32 = vpop.f32.mrb[4].mxu0 }
 0x309   :  { %v759_v34 = vpop.f32.mrb[5].mxu0 }
 0x30a   :  { %v760_v35 = vadd.f32 %v759_v34, %v758_v32  ;;  %v761_v36 = vpop.f32.mrb[6].mxu0 }
 0x30b   :  { %v762_v37 = vpop.f32.mrb[7].mxu0 }
 0x30c   :  { %v654_v38 = vadd.f32 %v760_v35, %v725_v33 }
 0x30e   :  { %659 = vst [vmem:[#allocation10] sm:$0xff] %v654_v38 }
 0x30f   :  { %969 = shalt.err (!%p966_p8)
}
 0x310   :  { %s970_s6 = scalar_lea.hbm %s1120_s7, 128 }
 0x311   :  { %p971_p9 = scmp.ne.s32.totalorder %s1120_s7, %s970_s6  ;;  %p974_p10 = scmp.lt.u32.totalorder %s970_s6, %s1120_s7 }
 0x313   :  { %p976_p11 = pnand %p974_p10, %p971_p9 }
 0x315   :  { %979 = shalt.err (!%p976_p11)
}
 0x316   :  { %669 = dma.vmem_to_hbm [thread:$0]  %s667_s30, 128, %s1120_s7, [#allocation4]  }
 0x317   :  { %986 = dma.done.wait [#allocation4], 128  }
 0x318   :  { %987 = vsyncadd [#allocation4], 4294967168 }
 0x319   :  { %673 = vsyncpa [#allocation3], 1 }
 0x31a   :  { %674 = vsyncpa [#allocation6], 1 }
 0x31b   :  { %675 = vsyncpa [#allocation9], 1 }
 0x31c   :  { %676 = vsyncpa [#allocation4], 1 }

</bundles_post_ra>
